<compile_context>
chip_gen: v7x
topology: tpu7x:2x2x1
jax: 0.10.0
libtpu: 0.0.40
codegen_flags: <defaults>
</compile_context>

<pallas_src>
import jax
import jax.numpy as jnp
from jax.experimental import pallas as pl
from jax.experimental.pallas import tpu as pltpu


def _mul_kernel(x_ref, s_ref, o_ref):
    # x_ref: (TC, HW) tile; s_ref: (TC, 1) per-row scale -> lane broadcast (VPU).
    o_ref[...] = x_ref[...] * s_ref[...]


def _sublane_multiple(dtype):
    """Sublane packing requirement for the second-minor dim."""
    itemsize = jnp.dtype(dtype).itemsize
    return max(8, 32 // itemsize)  # 8 for f32, 16 for bf16/f16, 32 for int8/fp8


def _pick_row_tile(rows, dtype):
    """2 balanced, sublane-aligned blocks if possible; else one full block.

    Keep the grid at 1-2 steps: per-step overhead (~0.35 us) is comparable to
    the whole HBM transfer time of this op, so finer tiling is pure loss.
    Two steps give one block per TensorCore on v7x via dimension_semantics.
    """
    m = _sublane_multiple(dtype)
    if rows % 2 == 0 and (rows // 2) % m == 0:
        return rows // 2
    return rows  # block_shape == full array dim is always legal


def broadcast_mul(x, scale):
    """x: [N, C, H, W], scale: [N, C, 1, 1] -> x * scale (same shape as x)."""
    N, C, H, W = x.shape
    assert scale.shape == (N, C, 1, 1)
    rows = N * C
    hw = H * W

    tc = _pick_row_tile(rows, x.dtype)
    grid = (rows // tc,)

    x2 = x.reshape(rows, hw)
    s2 = scale.reshape(rows, 1).astype(x.dtype)

    out2 = pl.pallas_call(
        _mul_kernel,
        out_shape=jax.ShapeDtypeStruct((rows, hw), x.dtype),
        grid_spec=pltpu.PrefetchScalarGridSpec(
            num_scalar_prefetch=0,
            grid=grid,
            in_specs=[
                pl.BlockSpec((tc, hw), lambda i: (i, 0)),
                pl.BlockSpec((tc, 1), lambda i: (i, 0)),  # per-step scale block
            ],
            out_specs=pl.BlockSpec((tc, hw), lambda i: (i, 0)),
        ),
        compiler_params=pltpu.CompilerParams(
            dimension_semantics=("parallel",),
        ),
    )(x2, s2)

    return out2.reshape(N, C, H, W)


if __name__ == "__main__":
    key = jax.random.PRNGKey(0)
    k1, k2 = jax.random.split(key)

    # Shapes matching the module's forward: x210 [1, 816, 14, 14], x215 [1, 816, 1, 1]
    x210 = jax.random.normal(k1, (1, 816, 14, 14), dtype=jnp.float32)
    x215 = jax.random.normal(k2, (1, 816, 1, 1), dtype=jnp.float32)

    out = broadcast_mul(x210, x215)
    out = jax.block_until_ready(out)

    ref = x210 * x215
    assert out.shape == ref.shape
    assert jnp.allclose(out, ref, atol=1e-6, rtol=1e-6)

    # Small odd-shaped case to exercise the single-full-block fallback path.
    k3, k4 = jax.random.split(k1)
    xs = jax.random.normal(k3, (1, 5, 4, 4), dtype=jnp.float32)
    ss = jax.random.normal(k4, (1, 5, 1, 1), dtype=jnp.float32)
    outs = jax.block_until_ready(broadcast_mul(xs, ss))
    assert jnp.allclose(outs, xs * ss, atol=1e-6, rtol=1e-6)

    print("KERNEL_OK")
</pallas_src>

<mosaic_0001>
module attributes {stable_mosaic.version = 11 : i64} {
  func.func @_mul_kernel(%arg0: i32, %arg1: memref<408x196xf32, #tpu.memory_space<vmem>>, %arg2: memref<408x1xf32, #tpu.memory_space<vmem>>, %arg3: memref<408x196xf32, #tpu.memory_space<vmem>>) attributes {dimension_semantics = [#tpu.dimension_semantics<parallel>], iteration_bounds = array<i64: 2>, scalar_prefetch = 0 : i64, scratch_operands = 0 : i64, tpu.core_type = #tpu.core_type<tc>, window_params = [{transform_indices = @transform_0, window_bounds = array<i64: 408, 196>}, {transform_indices = @transform_1, window_bounds = array<i64: 408, 1>}, {transform_indices = @transform_2, window_bounds = array<i64: 408, 196>}]} {
    %c0 = arith.constant 0 : index
    %c0_0 = arith.constant 0 : index
    %0 = vector.load %arg1[%c0, %c0_0] : memref<408x196xf32, #tpu.memory_space<vmem>>, vector<408x196xf32>
    %c0_1 = arith.constant 0 : index
    %c0_2 = arith.constant 0 : index
    %1 = vector.load %arg2[%c0_1, %c0_2] : memref<408x1xf32, #tpu.memory_space<vmem>>, vector<408x1xf32>
    %2 = vector.broadcast %1 : vector<408x1xf32> to vector<408x196xf32>
    %3 = arith.mulf %0, %2 : vector<408x196xf32>
    %c0_3 = arith.constant 0 : index
    %c0_4 = arith.constant 0 : index
    %4 = vector.load %arg3[%c0_3, %c0_4] : memref<408x196xf32, #tpu.memory_space<vmem>>, vector<408x196xf32>
    tpu.vector_store %arg3[%c0_3, %c0_4], %3 {strides = array<i32>} : memref<408x196xf32, #tpu.memory_space<vmem>>, vector<408x196xf32>,
    return
  }
  func.func @transform_0(%arg0: i32) -> (i32, i32) {
    %c0_i32 = arith.constant 0 : i32
    %c0_i32_0 = arith.constant 0 : i32
    return %arg0, %c0_i32 : i32, i32
  }
  func.func @transform_1(%arg0: i32) -> (i32, i32) {
    %c0_i32 = arith.constant 0 : i32
    %c0_i32_0 = arith.constant 0 : i32
    return %arg0, %c0_i32 : i32, i32
  }
  func.func @transform_2(%arg0: i32) -> (i32, i32) {
    %c0_i32 = arith.constant 0 : i32
    %c0_i32_0 = arith.constant 0 : i32
    return %arg0, %c0_i32 : i32, i32
  }
}

</mosaic_0001>

<bundles_post_ra>
// kernel: tpu_custom_call.1
= control target key start
LH: loop header
LB: loop body
LE: loop exit
PB: predicated region body
PF: predicated region fallthrough
CT: control target
= control target key end

     0   :  { %s906_s9 = smov 0   ;;  %s1242_s0 = inlined_call_operand.vmem [shape: f32[816,196], index: 0, kind: input, shape index: {}]   ;;  %s1243_s1 = inlined_call_operand.vmem [shape: f32[816,1], index: 1, kind: input, shape index: {}]   ;;  %s1244_s2 = inlined_call_operand.vmem [shape: f32[816,196], index: 2, kind: output, shape index: {}]  }
   0x1 LB: > { %s857_s10 = sadd.s32 4294967295, %s888_s9   ;;  %p861_p0 = scmp.ge.s32.totalorder %s888_s9, 1  ;;  %s888_s9 = sphi %s906_s9, %s12_s9  }
   0x2   : > { %p125_p1 = scmp.lt.s32.totalorder %s888_s9, 3 }
   0x4   : > { %p126_p2 = pnand %p861_p0, %p125_p1 }
   0x5   : > { %s154_s11 = smul.u32 (!%p126_p2), 51, %s857_s10  ;;  %v890_v0 = vmov (!%p126_p2), 0   ;;  %vm685_vm0 = vcmask (!%p126_p2), 556032  }
   0x6   : > { %129 = sbr.rel (%p126_p2) target bundleno = 248 (0xf8), region = 28  ;;  %881 = vset.pattern.permute.xlu1 (!%p126_p2), %v890_v0  ;;  %880 = vset.pattern.permute.xlu0 (!%p126_p2), %v890_v0 }
   0x7   : > { %p155_p3 = scmp.lt.s32.totalorder (!%p126_p2), %s154_s11, 101 }
   0xd   : > { %s1246_s11 = smov (!%p155_p3, %s154_s11), 101 }
   0xe   : > { %s864_s12 = sshll.u32 %s1246_s11, 3  ;;  %s869_s16 = sshll.u32 %s1246_s11, 4 }
   0xf   : > { %s920_s15 = scalar_lea.vmem %s1243_s1, %s864_s12  ;;  %s977_s19 = scalar_lea.vmem %s1242_s0, %s869_s16 }
  0x10   : > { %v278_v1 = vld [vmem:[%s920_s15 + $0x10] sm:$0xff]  ;;  %v276_v2 = vld [vmem:[%s920_s15] sm:$0xff]  ;;  %v279_v3 = vld [vmem:[%s920_s15 + $0x18] sm:$0xff]  ;;  %s986_s22 = scalar_lea.vmem %s1244_s2, %s869_s16 }
  0x11   : > { %339 = vperm.xlu1 %881, %v278_v1   ;;  %329 = vperm.xlu0 %880, %v276_v2   ;;  %v277_v4 = vld [vmem:[%s920_s15 + $0x8] sm:$0xff]  ;;  %v280_v6 = vld [vmem:[%s920_s15 + $0x20] sm:$0xff]  ;;  %v283_v7 = vld [vmem:[%s920_s15 + $0x38] sm:$0xff] }
  0x12   : > { %v281_v5 = vld [vmem:[%s920_s15 + $0x28] sm:$0xff]  ;;  %v282_v8 = vld [vmem:[%s920_s15 + $0x30] sm:$0xff]  ;;  %v284_v10 = vld [vmem:[%s920_s15 + $0x40] sm:$0xff] }
  0x13   : > { %v285_v9 = vld [vmem:[%s920_s15 + $0x48] sm:$0xff]  ;;  %v287_v11 = vld [vmem:[%s920_s15 + $0x58] sm:$0xff]  ;;  %v286_v12 = vld [vmem:[%s920_s15 + $0x50] sm:$0xff] }
  0x14   : > { %v289_v13 = vld [vmem:[%s920_s15 + $0x68] sm:$0xff]  ;;  %v288_v14 = vld [vmem:[%s920_s15 + $0x60] sm:$0xff]  ;;  %v291_v15 = vld [vmem:[%s920_s15 + $0x78] sm:$0xff] }
  0x15   : > { %344 = vperm.xlu1 %881, %v279_v3   ;;  %334 = vperm.xlu0 %880, %v277_v4   ;;  %v290_v16 = vld [vmem:[%s920_s15 + $0x70] sm:$0xff]  ;;  %v293_v17 = vld [vmem:[%s920_s15 + $0x88] sm:$0xff]  ;;  %v292_v18 = vld [vmem:[%s920_s15 + $0x80] sm:$0xff] }
  0x16   : > { %v295_v19 = vld [vmem:[%s920_s15 + $0x98] sm:$0xff]  ;;  %v294_v20 = vld [vmem:[%s920_s15 + $0x90] sm:$0xff]  ;;  %v297_v21 = vld [vmem:[%s920_s15 + $0xa8] sm:$0xff] }
  0x17   : > { %v296_v22 = vld [vmem:[%s920_s15 + $0xa0] sm:$0xff]  ;;  %v299_v23 = vld [vmem:[%s920_s15 + $0xb8] sm:$0xff]  ;;  %v298_v24 = vld [vmem:[%s920_s15 + $0xb0] sm:$0xff] }
  0x18   : > { %v301_v25 = vld [vmem:[%s920_s15 + $0xc8] sm:$0xff]  ;;  %v300_v26 = vld [vmem:[%s920_s15 + $0xc0] sm:$0xff]  ;;  %v303_v27 = vld [vmem:[%s920_s15 + $0xd8] sm:$0xff] }
  0x19   : > { %354 = vperm.xlu1 %881, %v281_v5   ;;  %349 = vperm.xlu0 %880, %v280_v6   ;;  %v302_v28 = vld [vmem:[%s920_s15 + $0xd0] sm:$0xff]  ;;  %v305_v29 = vld [vmem:[%s920_s15 + $0xe8] sm:$0xff]  ;;  %v304_v30 = vld [vmem:[%s920_s15 + $0xe0] sm:$0xff] }
  0x1a   : > { %v307_v31 = vld [vmem:[%s920_s15 + $0xf8] sm:$0xff]  ;;  %v306_v32 = vld [vmem:[%s920_s15 + $0xf0] sm:$0xff]  ;;  %v309_v33 = vld [vmem:[%s920_s15 + $0x108] sm:$0xff] }
  0x1b   : > { %v308_v34 = vld [vmem:[%s920_s15 + $0x100] sm:$0xff]  ;;  %v311_v35 = vld [vmem:[%s920_s15 + $0x118] sm:$0xff]  ;;  %v310_v36 = vld [vmem:[%s920_s15 + $0x110] sm:$0xff] }
  0x1c   : > { %v313_v37 = vld [vmem:[%s920_s15 + $0x128] sm:$0xff]  ;;  %v312_v38 = vld [vmem:[%s920_s15 + $0x120] sm:$0xff]  ;;  %v315_v39 = vld [vmem:[%s920_s15 + $0x138] sm:$0xff] }
  0x1d   : > { %364 = vperm.xlu1 %881, %v283_v7   ;;  %359 = vperm.xlu0 %880, %v282_v8   ;;  %v314_v40 = vld [vmem:[%s920_s15 + $0x130] sm:$0xff]  ;;  %v317_v41 = vld [vmem:[%s920_s15 + $0x148] sm:$0xff]  ;;  %v316_v42 = vld [vmem:[%s920_s15 + $0x140] sm:$0xff] }
  0x1e   : > { %v319_v43 = vld [vmem:[%s920_s15 + $0x158] sm:$0xff]  ;;  %v318_v44 = vld [vmem:[%s920_s15 + $0x150] sm:$0xff]  ;;  %v321_v45 = vld [vmem:[%s920_s15 + $0x168] sm:$0xff] }
  0x1f   : > { %v320_v46 = vld [vmem:[%s920_s15 + $0x160] sm:$0xff]  ;;  %v323_v47 = vld [vmem:[%s920_s15 + $0x178] sm:$0xff]  ;;  %v322_v48 = vld [vmem:[%s920_s15 + $0x170] sm:$0xff] }
  0x20   : > { %v325_v49 = vld [vmem:[%s920_s15 + $0x188] sm:$0xff]  ;;  %v324_v50 = vld [vmem:[%s920_s15 + $0x180] sm:$0xff]  ;;  %v326_v51 = vld [vmem:[%s920_s15 + $0x190] sm:$0xff] }
  0x21   : > { %374 = vperm.xlu1 %881, %v285_v9   ;;  %369 = vperm.xlu0 %880, %v284_v10   ;;  %v178_v52 = vld [vmem:[%s977_s19 + $0x20] sm:$0xff]  ;;  %v179_v53 = vld [vmem:[%s977_s19 + $0x28] sm:$0xff]  ;;  %v180_v62 = vld [vmem:[%s977_s19 + $0x30] sm:$0xff] }
  0x22   : > { %v174_v54 = vld [vmem:[%s977_s19] sm:$0xff]  ;;  %v175_v55 = vld [vmem:[%s977_s19 + $0x8] sm:$0xff]  ;;  %v181_v63 = vld [vmem:[%s977_s19 + $0x38] sm:$0xff] }
  0x23   : > { %v176_v0 = vld [vmem:[%s977_s19 + $0x10] sm:$0xff]  ;;  %v177_v1 = vld [vmem:[%s977_s19 + $0x18] sm:$0xff]  ;;  %v182_v10 = vld [vmem:[%s977_s19 + $0x40] sm:$0xff] }
  0x24   : > { %v184_v8 = vld [vmem:[%s977_s19 + $0x50] sm:$0xff]  ;;  %v185_v9 = vld [vmem:[%s977_s19 + $0x58] sm:$0xff] }
  0x25   : > { %384 = vperm.xlu1 %881, %v287_v11   ;;  %379 = vperm.xlu0 %880, %v286_v12   ;;  %v183_v11 = vld [vmem:[%s977_s19 + $0x48] sm:$0xff] }
  0x29   : > { %394 = vperm.xlu1 %881, %v289_v13   ;;  %389 = vperm.xlu0 %880, %v288_v14  }
  0x2d   : > { %404 = vperm.xlu1 %881, %v291_v15   ;;  %399 = vperm.xlu0 %880, %v290_v16  }
  0x31   : > { %414 = vperm.xlu1 %881, %v293_v17   ;;  %409 = vperm.xlu0 %880, %v292_v18   ;;  %v188_v18 = vld [vmem:[%s977_s19 + $0x70] sm:$0xff] }
  0x35   : > { %424 = vperm.xlu1 %881, %v295_v19   ;;  %419 = vperm.xlu0 %880, %v294_v20   ;;  %v189_v19 = vld [vmem:[%s977_s19 + $0x78] sm:$0xff]  ;;  %v186_v20 = vld [vmem:[%s977_s19 + $0x60] sm:$0xff] }
  0x39   : > { %434 = vperm.xlu1 %881, %v297_v21   ;;  %429 = vperm.xlu0 %880, %v296_v22   ;;  %v187_v21 = vld [vmem:[%s977_s19 + $0x68] sm:$0xff] }
  0x3d   : > { %444 = vperm.xlu1 %881, %v299_v23   ;;  %439 = vperm.xlu0 %880, %v298_v24  }
  0x41   : > { %454 = vperm.xlu1 %881, %v301_v25   ;;  %449 = vperm.xlu0 %880, %v300_v26  }
  0x45   : > { %464 = vperm.xlu1 %881, %v303_v27   ;;  %459 = vperm.xlu0 %880, %v302_v28   ;;  %v192_v28 = vld [vmem:[%s977_s19 + $0x90] sm:$0xff] }
  0x49   : > { %474 = vperm.xlu1 %881, %v305_v29   ;;  %469 = vperm.xlu0 %880, %v304_v30   ;;  %v193_v29 = vld [vmem:[%s977_s19 + $0x98] sm:$0xff]  ;;  %v190_v30 = vld [vmem:[%s977_s19 + $0x80] sm:$0xff] }
  0x4d   : > { %484 = vperm.xlu1 %881, %v307_v31   ;;  %479 = vperm.xlu0 %880, %v306_v32   ;;  %v191_v31 = vld [vmem:[%s977_s19 + $0x88] sm:$0xff] }
  0x51   : > { %494 = vperm.xlu1 %881, %v309_v33   ;;  %489 = vperm.xlu0 %880, %v308_v34  }
  0x55   : > { %504 = vperm.xlu1 %881, %v311_v35   ;;  %499 = vperm.xlu0 %880, %v310_v36  }
  0x59   : > { %514 = vperm.xlu1 %881, %v313_v37   ;;  %509 = vperm.xlu0 %880, %v312_v38   ;;  %v196_v38 = vld [vmem:[%s977_s19 + $0xb0] sm:$0xff] }
  0x5d   : > { %524 = vperm.xlu1 %881, %v315_v39   ;;  %519 = vperm.xlu0 %880, %v314_v40   ;;  %v197_v39 = vld [vmem:[%s977_s19 + $0xb8] sm:$0xff]  ;;  %v194_v40 = vld [vmem:[%s977_s19 + $0xa0] sm:$0xff] }
  0x61   : > { %534 = vperm.xlu1 %881, %v317_v41   ;;  %529 = vperm.xlu0 %880, %v316_v42   ;;  %v195_v41 = vld [vmem:[%s977_s19 + $0xa8] sm:$0xff] }
  0x65   : > { %544 = vperm.xlu1 %881, %v319_v43   ;;  %539 = vperm.xlu0 %880, %v318_v44  }
  0x69   : > { %554 = vperm.xlu1 %881, %v321_v45   ;;  %549 = vperm.xlu0 %880, %v320_v46  }
  0x6d   : > { %564 = vperm.xlu1 %881, %v323_v47   ;;  %559 = vperm.xlu0 %880, %v322_v48   ;;  %v200_v48 = vld [vmem:[%s977_s19 + $0xd0] sm:$0xff] }
  0x71   : > { %574 = vperm.xlu1 %881, %v325_v49   ;;  %569 = vperm.xlu0 %880, %v324_v50   ;;  %v201_v49 = vld [vmem:[%s977_s19 + $0xd8] sm:$0xff]  ;;  %v198_v50 = vld [vmem:[%s977_s19 + $0xc0] sm:$0xff] }
  0x75   : > { %579 = vperm.xlu0 %880, %v326_v51   ;;  %v199_v51 = vld [vmem:[%s977_s19 + $0xc8] sm:$0xff] }
  0x90   : > { %v340_v56 = vpop.permute.xlu1 %339  ;;  %v330_v57 = vpop.permute.xlu0 %329 }
  0x91   : > { %v586_v58 = vmul.f32 %v340_v56, %v178_v52  ;;  %v587_v59 = vmul.f32 %v340_v56, %v179_v53  ;;  %v582_v60 = vmul.f32 %v330_v57, %v174_v54  ;;  %v583_v61 = vmul.f32 %v330_v57, %v175_v55 }
  0x93   : > { %689 = vst [vmem:[%s986_s22 + $0x20] sm:$0xff] %v586_v58  ;;  %690 = vst.msk [vmem:[%s986_s22 + $0x28] sm:$0xff] %vm685_vm0, %v587_v59  ;;  %v204_v58 = vld [vmem:[%s977_s19 + $0xf0] sm:$0xff]  ;;  %v205_v59 = vld [vmem:[%s977_s19 + $0xf8] sm:$0xff] }
  0x94   : > { %684 = vst [vmem:[%s986_s22] sm:$0xff] %v582_v60  ;;  %686 = vst.msk [vmem:[%s986_s22 + $0x8] sm:$0xff] %vm685_vm0, %v583_v61  ;;  %v345_v2 = vpop.permute.xlu1 %344  ;;  %v335_v3 = vpop.permute.xlu0 %334  ;;  %v202_v60 = vld [vmem:[%s977_s19 + $0xe0] sm:$0xff]  ;;  %v203_v61 = vld [vmem:[%s977_s19 + $0xe8] sm:$0xff] }
  0x95   : > { %v588_v4 = vmul.f32 %v345_v2, %v180_v62  ;;  %v589_v5 = vmul.f32 %v345_v2, %v181_v63  ;;  %v584_v6 = vmul.f32 %v335_v3, %v176_v0  ;;  %v585_v7 = vmul.f32 %v335_v3, %v177_v1 }
  0x97   : > { %691 = vst [vmem:[%s986_s22 + $0x30] sm:$0xff] %v588_v4  ;;  %692 = vst.msk [vmem:[%s986_s22 + $0x38] sm:$0xff] %vm685_vm0, %v589_v5  ;;  %v208_v4 = vld [vmem:[%s977_s19 + $0x110] sm:$0xff]  ;;  %v209_v5 = vld [vmem:[%s977_s19 + $0x118] sm:$0xff] }
  0x98   : > { %687 = vst [vmem:[%s986_s22 + $0x10] sm:$0xff] %v584_v6  ;;  %688 = vst.msk [vmem:[%s986_s22 + $0x18] sm:$0xff] %vm685_vm0, %v585_v7  ;;  %v355_v12 = vpop.permute.xlu1 %354  ;;  %v350_v13 = vpop.permute.xlu0 %349  ;;  %v206_v6 = vld [vmem:[%s977_s19 + $0x100] sm:$0xff]  ;;  %v207_v7 = vld [vmem:[%s977_s19 + $0x108] sm:$0xff] }
  0x99   : > { %v592_v14 = vmul.f32 %v355_v12, %v184_v8  ;;  %v593_v15 = vmul.f32 %v355_v12, %v185_v9  ;;  %v590_v16 = vmul.f32 %v350_v13, %v182_v10  ;;  %v591_v17 = vmul.f32 %v350_v13, %v183_v11 }
  0x9b   : > { %695 = vst [vmem:[%s986_s22 + $0x50] sm:$0xff] %v592_v14  ;;  %696 = vst.msk [vmem:[%s986_s22 + $0x58] sm:$0xff] %vm685_vm0, %v593_v15  ;;  %v212_v14 = vld [vmem:[%s977_s19 + $0x130] sm:$0xff]  ;;  %v213_v15 = vld [vmem:[%s977_s19 + $0x138] sm:$0xff] }
  0x9c   : > { %693 = vst [vmem:[%s986_s22 + $0x40] sm:$0xff] %v590_v16  ;;  %694 = vst.msk [vmem:[%s986_s22 + $0x48] sm:$0xff] %vm685_vm0, %v591_v17  ;;  %v365_v22 = vpop.permute.xlu1 %364  ;;  %v360_v23 = vpop.permute.xlu0 %359  ;;  %v210_v16 = vld [vmem:[%s977_s19 + $0x120] sm:$0xff]  ;;  %v211_v17 = vld [vmem:[%s977_s19 + $0x128] sm:$0xff] }
  0x9d   : > { %v596_v24 = vmul.f32 %v365_v22, %v188_v18  ;;  %v597_v25 = vmul.f32 %v365_v22, %v189_v19  ;;  %v594_v26 = vmul.f32 %v360_v23, %v186_v20  ;;  %v595_v27 = vmul.f32 %v360_v23, %v187_v21 }
  0x9f   : > { %699 = vst [vmem:[%s986_s22 + $0x70] sm:$0xff] %v596_v24  ;;  %700 = vst.msk [vmem:[%s986_s22 + $0x78] sm:$0xff] %vm685_vm0, %v597_v25  ;;  %v216_v24 = vld [vmem:[%s977_s19 + $0x150] sm:$0xff]  ;;  %v217_v25 = vld [vmem:[%s977_s19 + $0x158] sm:$0xff] }
  0xa0   : > { %697 = vst [vmem:[%s986_s22 + $0x60] sm:$0xff] %v594_v26  ;;  %698 = vst.msk [vmem:[%s986_s22 + $0x68] sm:$0xff] %vm685_vm0, %v595_v27  ;;  %v375_v32 = vpop.permute.xlu1 %374  ;;  %v370_v33 = vpop.permute.xlu0 %369  ;;  %v214_v26 = vld [vmem:[%s977_s19 + $0x140] sm:$0xff]  ;;  %v215_v27 = vld [vmem:[%s977_s19 + $0x148] sm:$0xff] }
  0xa1   : > { %v600_v34 = vmul.f32 %v375_v32, %v192_v28  ;;  %v601_v35 = vmul.f32 %v375_v32, %v193_v29  ;;  %v598_v36 = vmul.f32 %v370_v33, %v190_v30  ;;  %v599_v37 = vmul.f32 %v370_v33, %v191_v31 }
  0xa3   : > { %703 = vst [vmem:[%s986_s22 + $0x90] sm:$0xff] %v600_v34  ;;  %704 = vst.msk [vmem:[%s986_s22 + $0x98] sm:$0xff] %vm685_vm0, %v601_v35  ;;  %v220_v34 = vld [vmem:[%s977_s19 + $0x170] sm:$0xff]  ;;  %v221_v35 = vld [vmem:[%s977_s19 + $0x178] sm:$0xff] }
  0xa4   : > { %701 = vst [vmem:[%s986_s22 + $0x80] sm:$0xff] %v598_v36  ;;  %702 = vst.msk [vmem:[%s986_s22 + $0x88] sm:$0xff] %vm685_vm0, %v599_v37  ;;  %v385_v42 = vpop.permute.xlu1 %384  ;;  %v380_v43 = vpop.permute.xlu0 %379  ;;  %v218_v36 = vld [vmem:[%s977_s19 + $0x160] sm:$0xff]  ;;  %v219_v37 = vld [vmem:[%s977_s19 + $0x168] sm:$0xff] }
  0xa5   : > { %v604_v44 = vmul.f32 %v385_v42, %v196_v38  ;;  %v605_v45 = vmul.f32 %v385_v42, %v197_v39  ;;  %v602_v46 = vmul.f32 %v380_v43, %v194_v40  ;;  %v603_v47 = vmul.f32 %v380_v43, %v195_v41 }
  0xa7   : > { %707 = vst [vmem:[%s986_s22 + $0xb0] sm:$0xff] %v604_v44  ;;  %708 = vst.msk [vmem:[%s986_s22 + $0xb8] sm:$0xff] %vm685_vm0, %v605_v45  ;;  %v224_v44 = vld [vmem:[%s977_s19 + $0x190] sm:$0xff]  ;;  %v225_v45 = vld [vmem:[%s977_s19 + $0x198] sm:$0xff] }
  0xa8   : > { %705 = vst [vmem:[%s986_s22 + $0xa0] sm:$0xff] %v602_v46  ;;  %706 = vst.msk [vmem:[%s986_s22 + $0xa8] sm:$0xff] %vm685_vm0, %v603_v47  ;;  %v395_v52 = vpop.permute.xlu1 %394  ;;  %v390_v53 = vpop.permute.xlu0 %389  ;;  %v222_v46 = vld [vmem:[%s977_s19 + $0x180] sm:$0xff]  ;;  %v223_v47 = vld [vmem:[%s977_s19 + $0x188] sm:$0xff] }
  0xa9   : > { %v608_v54 = vmul.f32 %v395_v52, %v200_v48  ;;  %v609_v55 = vmul.f32 %v395_v52, %v201_v49  ;;  %v606_v56 = vmul.f32 %v390_v53, %v198_v50  ;;  %v607_v57 = vmul.f32 %v390_v53, %v199_v51 }
  0xab   : > { %711 = vst [vmem:[%s986_s22 + $0xd0] sm:$0xff] %v608_v54  ;;  %712 = vst.msk [vmem:[%s986_s22 + $0xd8] sm:$0xff] %vm685_vm0, %v609_v55  ;;  %v228_v54 = vld [vmem:[%s977_s19 + $0x1b0] sm:$0xff]  ;;  %v229_v55 = vld [vmem:[%s977_s19 + $0x1b8] sm:$0xff] }
  0xac   : > { %709 = vst [vmem:[%s986_s22 + $0xc0] sm:$0xff] %v606_v56  ;;  %710 = vst.msk [vmem:[%s986_s22 + $0xc8] sm:$0xff] %vm685_vm0, %v607_v57  ;;  %v405_v62 = vpop.permute.xlu1 %404  ;;  %v400_v63 = vpop.permute.xlu0 %399  ;;  %v226_v56 = vld [vmem:[%s977_s19 + $0x1a0] sm:$0xff]  ;;  %v227_v57 = vld [vmem:[%s977_s19 + $0x1a8] sm:$0xff] }
  0xad   : > { %v612_v0 = vmul.f32 %v405_v62, %v204_v58  ;;  %v613_v1 = vmul.f32 %v405_v62, %v205_v59  ;;  %v610_v2 = vmul.f32 %v400_v63, %v202_v60  ;;  %v611_v3 = vmul.f32 %v400_v63, %v203_v61 }
  0xaf   : > { %715 = vst [vmem:[%s986_s22 + $0xf0] sm:$0xff] %v612_v0  ;;  %716 = vst.msk [vmem:[%s986_s22 + $0xf8] sm:$0xff] %vm685_vm0, %v613_v1  ;;  %v232_v0 = vld [vmem:[%s977_s19 + $0x1d0] sm:$0xff]  ;;  %v233_v1 = vld [vmem:[%s977_s19 + $0x1d8] sm:$0xff] }
  0xb0   : > { %713 = vst [vmem:[%s986_s22 + $0xe0] sm:$0xff] %v610_v2  ;;  %714 = vst.msk [vmem:[%s986_s22 + $0xe8] sm:$0xff] %vm685_vm0, %v611_v3  ;;  %v415_v8 = vpop.permute.xlu1 %414  ;;  %v410_v9 = vpop.permute.xlu0 %409  ;;  %v230_v2 = vld [vmem:[%s977_s19 + $0x1c0] sm:$0xff]  ;;  %v231_v3 = vld [vmem:[%s977_s19 + $0x1c8] sm:$0xff] }
  0xb1   : > { %v616_v10 = vmul.f32 %v415_v8, %v208_v4  ;;  %v617_v11 = vmul.f32 %v415_v8, %v209_v5  ;;  %v614_v12 = vmul.f32 %v410_v9, %v206_v6  ;;  %v615_v13 = vmul.f32 %v410_v9, %v207_v7 }
  0xb3   : > { %719 = vst [vmem:[%s986_s22 + $0x110] sm:$0xff] %v616_v10  ;;  %720 = vst.msk [vmem:[%s986_s22 + $0x118] sm:$0xff] %vm685_vm0, %v617_v11  ;;  %v236_v10 = vld [vmem:[%s977_s19 + $0x1f0] sm:$0xff]  ;;  %v237_v11 = vld [vmem:[%s977_s19 + $0x1f8] sm:$0xff] }
  0xb4   : > { %717 = vst [vmem:[%s986_s22 + $0x100] sm:$0xff] %v614_v12  ;;  %718 = vst.msk [vmem:[%s986_s22 + $0x108] sm:$0xff] %vm685_vm0, %v615_v13  ;;  %v425_v18 = vpop.permute.xlu1 %424  ;;  %v420_v19 = vpop.permute.xlu0 %419  ;;  %v234_v12 = vld [vmem:[%s977_s19 + $0x1e0] sm:$0xff]  ;;  %v235_v13 = vld [vmem:[%s977_s19 + $0x1e8] sm:$0xff] }
  0xb5   : > { %v620_v20 = vmul.f32 %v425_v18, %v212_v14  ;;  %v621_v21 = vmul.f32 %v425_v18, %v213_v15  ;;  %v618_v22 = vmul.f32 %v420_v19, %v210_v16  ;;  %v619_v23 = vmul.f32 %v420_v19, %v211_v17 }
  0xb7   : > { %723 = vst [vmem:[%s986_s22 + $0x130] sm:$0xff] %v620_v20  ;;  %724 = vst.msk [vmem:[%s986_s22 + $0x138] sm:$0xff] %vm685_vm0, %v621_v21  ;;  %v240_v20 = vld [vmem:[%s977_s19 + $0x210] sm:$0xff]  ;;  %v241_v21 = vld [vmem:[%s977_s19 + $0x218] sm:$0xff] }
  0xb8   : > { %721 = vst [vmem:[%s986_s22 + $0x120] sm:$0xff] %v618_v22  ;;  %722 = vst.msk [vmem:[%s986_s22 + $0x128] sm:$0xff] %vm685_vm0, %v619_v23  ;;  %v435_v28 = vpop.permute.xlu1 %434  ;;  %v430_v29 = vpop.permute.xlu0 %429  ;;  %v238_v22 = vld [vmem:[%s977_s19 + $0x200] sm:$0xff]  ;;  %v239_v23 = vld [vmem:[%s977_s19 + $0x208] sm:$0xff] }
  0xb9   : > { %v624_v30 = vmul.f32 %v435_v28, %v216_v24  ;;  %v625_v31 = vmul.f32 %v435_v28, %v217_v25  ;;  %v622_v32 = vmul.f32 %v430_v29, %v214_v26  ;;  %v623_v33 = vmul.f32 %v430_v29, %v215_v27 }
  0xbb   : > { %727 = vst [vmem:[%s986_s22 + $0x150] sm:$0xff] %v624_v30  ;;  %728 = vst.msk [vmem:[%s986_s22 + $0x158] sm:$0xff] %vm685_vm0, %v625_v31  ;;  %v244_v30 = vld [vmem:[%s977_s19 + $0x230] sm:$0xff]  ;;  %v245_v31 = vld [vmem:[%s977_s19 + $0x238] sm:$0xff] }
  0xbc   : > { %725 = vst [vmem:[%s986_s22 + $0x140] sm:$0xff] %v622_v32  ;;  %726 = vst.msk [vmem:[%s986_s22 + $0x148] sm:$0xff] %vm685_vm0, %v623_v33  ;;  %v445_v38 = vpop.permute.xlu1 %444  ;;  %v440_v39 = vpop.permute.xlu0 %439  ;;  %v242_v32 = vld [vmem:[%s977_s19 + $0x220] sm:$0xff]  ;;  %v243_v33 = vld [vmem:[%s977_s19 + $0x228] sm:$0xff] }
  0xbd   : > { %v628_v40 = vmul.f32 %v445_v38, %v220_v34  ;;  %v629_v41 = vmul.f32 %v445_v38, %v221_v35  ;;  %v626_v42 = vmul.f32 %v440_v39, %v218_v36  ;;  %v627_v43 = vmul.f32 %v440_v39, %v219_v37 }
  0xbf   : > { %731 = vst [vmem:[%s986_s22 + $0x170] sm:$0xff] %v628_v40  ;;  %732 = vst.msk [vmem:[%s986_s22 + $0x178] sm:$0xff] %vm685_vm0, %v629_v41  ;;  %v248_v40 = vld [vmem:[%s977_s19 + $0x250] sm:$0xff]  ;;  %v249_v41 = vld [vmem:[%s977_s19 + $0x258] sm:$0xff] }
  0xc0   : > { %729 = vst [vmem:[%s986_s22 + $0x160] sm:$0xff] %v626_v42  ;;  %730 = vst.msk [vmem:[%s986_s22 + $0x168] sm:$0xff] %vm685_vm0, %v627_v43  ;;  %v455_v48 = vpop.permute.xlu1 %454  ;;  %v450_v49 = vpop.permute.xlu0 %449  ;;  %v246_v42 = vld [vmem:[%s977_s19 + $0x240] sm:$0xff]  ;;  %v247_v43 = vld [vmem:[%s977_s19 + $0x248] sm:$0xff] }
  0xc1   : > { %v632_v50 = vmul.f32 %v455_v48, %v224_v44  ;;  %v633_v51 = vmul.f32 %v455_v48, %v225_v45  ;;  %v630_v52 = vmul.f32 %v450_v49, %v222_v46  ;;  %v631_v53 = vmul.f32 %v450_v49, %v223_v47 }
  0xc3   : > { %735 = vst [vmem:[%s986_s22 + $0x190] sm:$0xff] %v632_v50  ;;  %736 = vst.msk [vmem:[%s986_s22 + $0x198] sm:$0xff] %vm685_vm0, %v633_v51  ;;  %v252_v50 = vld [vmem:[%s977_s19 + $0x270] sm:$0xff]  ;;  %v253_v51 = vld [vmem:[%s977_s19 + $0x278] sm:$0xff] }
  0xc4   : > { %733 = vst [vmem:[%s986_s22 + $0x180] sm:$0xff] %v630_v52  ;;  %734 = vst.msk [vmem:[%s986_s22 + $0x188] sm:$0xff] %vm685_vm0, %v631_v53  ;;  %v465_v58 = vpop.permute.xlu1 %464  ;;  %v460_v59 = vpop.permute.xlu0 %459  ;;  %v250_v52 = vld [vmem:[%s977_s19 + $0x260] sm:$0xff]  ;;  %v251_v53 = vld [vmem:[%s977_s19 + $0x268] sm:$0xff] }
  0xc5   : > { %v636_v60 = vmul.f32 %v465_v58, %v228_v54  ;;  %v637_v61 = vmul.f32 %v465_v58, %v229_v55  ;;  %v634_v62 = vmul.f32 %v460_v59, %v226_v56  ;;  %v635_v63 = vmul.f32 %v460_v59, %v227_v57 }
  0xc7   : > { %739 = vst [vmem:[%s986_s22 + $0x1b0] sm:$0xff] %v636_v60  ;;  %740 = vst.msk [vmem:[%s986_s22 + $0x1b8] sm:$0xff] %vm685_vm0, %v637_v61  ;;  %v256_v60 = vld [vmem:[%s977_s19 + $0x290] sm:$0xff]  ;;  %v257_v61 = vld [vmem:[%s977_s19 + $0x298] sm:$0xff] }
  0xc8   : > { %737 = vst [vmem:[%s986_s22 + $0x1a0] sm:$0xff] %v634_v62  ;;  %738 = vst.msk [vmem:[%s986_s22 + $0x1a8] sm:$0xff] %vm685_vm0, %v635_v63  ;;  %v475_v4 = vpop.permute.xlu1 %474  ;;  %v470_v5 = vpop.permute.xlu0 %469  ;;  %v254_v62 = vld [vmem:[%s977_s19 + $0x280] sm:$0xff]  ;;  %v255_v63 = vld [vmem:[%s977_s19 + $0x288] sm:$0xff] }
  0xc9   : > { %v640_v6 = vmul.f32 %v475_v4, %v232_v0  ;;  %v641_v7 = vmul.f32 %v475_v4, %v233_v1  ;;  %v638_v8 = vmul.f32 %v470_v5, %v230_v2  ;;  %v639_v9 = vmul.f32 %v470_v5, %v231_v3 }
  0xcb   : > { %743 = vst [vmem:[%s986_s22 + $0x1d0] sm:$0xff] %v640_v6  ;;  %744 = vst.msk [vmem:[%s986_s22 + $0x1d8] sm:$0xff] %vm685_vm0, %v641_v7  ;;  %v260_v6 = vld [vmem:[%s977_s19 + $0x2b0] sm:$0xff]  ;;  %v261_v7 = vld [vmem:[%s977_s19 + $0x2b8] sm:$0xff] }
  0xcc   : > { %741 = vst [vmem:[%s986_s22 + $0x1c0] sm:$0xff] %v638_v8  ;;  %742 = vst.msk [vmem:[%s986_s22 + $0x1c8] sm:$0xff] %vm685_vm0, %v639_v9  ;;  %v485_v14 = vpop.permute.xlu1 %484  ;;  %v480_v15 = vpop.permute.xlu0 %479  ;;  %v258_v8 = vld [vmem:[%s977_s19 + $0x2a0] sm:$0xff]  ;;  %v259_v9 = vld [vmem:[%s977_s19 + $0x2a8] sm:$0xff] }
  0xcd   : > { %v644_v16 = vmul.f32 %v485_v14, %v236_v10  ;;  %v645_v17 = vmul.f32 %v485_v14, %v237_v11  ;;  %v642_v18 = vmul.f32 %v480_v15, %v234_v12  ;;  %v643_v19 = vmul.f32 %v480_v15, %v235_v13 }
  0xcf   : > { %747 = vst [vmem:[%s986_s22 + $0x1f0] sm:$0xff] %v644_v16  ;;  %748 = vst.msk [vmem:[%s986_s22 + $0x1f8] sm:$0xff] %vm685_vm0, %v645_v17  ;;  %v264_v16 = vld [vmem:[%s977_s19 + $0x2d0] sm:$0xff]  ;;  %v265_v17 = vld [vmem:[%s977_s19 + $0x2d8] sm:$0xff] }
  0xd0   : > { %745 = vst [vmem:[%s986_s22 + $0x1e0] sm:$0xff] %v642_v18  ;;  %746 = vst.msk [vmem:[%s986_s22 + $0x1e8] sm:$0xff] %vm685_vm0, %v643_v19  ;;  %v495_v24 = vpop.permute.xlu1 %494  ;;  %v490_v25 = vpop.permute.xlu0 %489  ;;  %v262_v18 = vld [vmem:[%s977_s19 + $0x2c0] sm:$0xff]  ;;  %v263_v19 = vld [vmem:[%s977_s19 + $0x2c8] sm:$0xff] }
  0xd1   : > { %v648_v26 = vmul.f32 %v495_v24, %v240_v20  ;;  %v649_v27 = vmul.f32 %v495_v24, %v241_v21  ;;  %v646_v28 = vmul.f32 %v490_v25, %v238_v22  ;;  %v647_v29 = vmul.f32 %v490_v25, %v239_v23 }
  0xd3   : > { %751 = vst [vmem:[%s986_s22 + $0x210] sm:$0xff] %v648_v26  ;;  %752 = vst.msk [vmem:[%s986_s22 + $0x218] sm:$0xff] %vm685_vm0, %v649_v27  ;;  %v268_v26 = vld [vmem:[%s977_s19 + $0x2f0] sm:$0xff]  ;;  %v269_v27 = vld [vmem:[%s977_s19 + $0x2f8] sm:$0xff] }
  0xd4   : > { %749 = vst [vmem:[%s986_s22 + $0x200] sm:$0xff] %v646_v28  ;;  %750 = vst.msk [vmem:[%s986_s22 + $0x208] sm:$0xff] %vm685_vm0, %v647_v29  ;;  %v505_v34 = vpop.permute.xlu1 %504  ;;  %v500_v35 = vpop.permute.xlu0 %499  ;;  %v266_v28 = vld [vmem:[%s977_s19 + $0x2e0] sm:$0xff]  ;;  %v267_v29 = vld [vmem:[%s977_s19 + $0x2e8] sm:$0xff] }
  0xd5   : > { %v652_v36 = vmul.f32 %v505_v34, %v244_v30  ;;  %v653_v37 = vmul.f32 %v505_v34, %v245_v31  ;;  %v650_v38 = vmul.f32 %v500_v35, %v242_v32  ;;  %v651_v39 = vmul.f32 %v500_v35, %v243_v33 }
  0xd7   : > { %755 = vst [vmem:[%s986_s22 + $0x230] sm:$0xff] %v652_v36  ;;  %756 = vst.msk [vmem:[%s986_s22 + $0x238] sm:$0xff] %vm685_vm0, %v653_v37  ;;  %v272_v36 = vld [vmem:[%s977_s19 + $0x310] sm:$0xff]  ;;  %v273_v37 = vld [vmem:[%s977_s19 + $0x318] sm:$0xff] }
  0xd8   : > { %753 = vst [vmem:[%s986_s22 + $0x220] sm:$0xff] %v650_v38  ;;  %754 = vst.msk [vmem:[%s986_s22 + $0x228] sm:$0xff] %vm685_vm0, %v651_v39  ;;  %v515_v44 = vpop.permute.xlu1 %514  ;;  %v510_v45 = vpop.permute.xlu0 %509  ;;  %v270_v38 = vld [vmem:[%s977_s19 + $0x300] sm:$0xff]  ;;  %v271_v39 = vld [vmem:[%s977_s19 + $0x308] sm:$0xff] }
  0xd9   : > { %v656_v46 = vmul.f32 %v515_v44, %v248_v40  ;;  %v657_v47 = vmul.f32 %v515_v44, %v249_v41  ;;  %v654_v48 = vmul.f32 %v510_v45, %v246_v42  ;;  %v655_v49 = vmul.f32 %v510_v45, %v247_v43 }
  0xdb   : > { %759 = vst [vmem:[%s986_s22 + $0x250] sm:$0xff] %v656_v46  ;;  %760 = vst.msk [vmem:[%s986_s22 + $0x258] sm:$0xff] %vm685_vm0, %v657_v47  ;;  %v274_v46 = vld [vmem:[%s977_s19 + $0x320] sm:$0xff]  ;;  %v275_v47 = vld [vmem:[%s977_s19 + $0x328] sm:$0xff] }
  0xdc   : > { %757 = vst [vmem:[%s986_s22 + $0x240] sm:$0xff] %v654_v48  ;;  %758 = vst.msk [vmem:[%s986_s22 + $0x248] sm:$0xff] %vm685_vm0, %v655_v49  ;;  %v525_v54 = vpop.permute.xlu1 %524  ;;  %v520_v55 = vpop.permute.xlu0 %519 }
  0xdd   : > { %v660_v56 = vmul.f32 %v525_v54, %v252_v50  ;;  %v661_v57 = vmul.f32 %v525_v54, %v253_v51  ;;  %v658_v58 = vmul.f32 %v520_v55, %v250_v52  ;;  %v659_v59 = vmul.f32 %v520_v55, %v251_v53 }
  0xdf   : > { %763 = vst [vmem:[%s986_s22 + $0x270] sm:$0xff] %v660_v56  ;;  %764 = vst.msk [vmem:[%s986_s22 + $0x278] sm:$0xff] %vm685_vm0, %v661_v57 }
  0xe0   : > { %761 = vst [vmem:[%s986_s22 + $0x260] sm:$0xff] %v658_v58  ;;  %762 = vst.msk [vmem:[%s986_s22 + $0x268] sm:$0xff] %vm685_vm0, %v659_v59  ;;  %v535_v0 = vpop.permute.xlu1 %534  ;;  %v530_v1 = vpop.permute.xlu0 %529 }
  0xe1   : > { %v664_v2 = vmul.f32 %v535_v0, %v256_v60  ;;  %v665_v3 = vmul.f32 %v535_v0, %v257_v61  ;;  %v662_v4 = vmul.f32 %v530_v1, %v254_v62  ;;  %v663_v5 = vmul.f32 %v530_v1, %v255_v63 }
  0xe3   : > { %767 = vst [vmem:[%s986_s22 + $0x290] sm:$0xff] %v664_v2  ;;  %768 = vst.msk [vmem:[%s986_s22 + $0x298] sm:$0xff] %vm685_vm0, %v665_v3 }
  0xe4   : > { %765 = vst [vmem:[%s986_s22 + $0x280] sm:$0xff] %v662_v4  ;;  %766 = vst.msk [vmem:[%s986_s22 + $0x288] sm:$0xff] %vm685_vm0, %v663_v5  ;;  %v545_v10 = vpop.permute.xlu1 %544  ;;  %v540_v11 = vpop.permute.xlu0 %539 }
  0xe5   : > { %v668_v12 = vmul.f32 %v545_v10, %v260_v6  ;;  %v669_v13 = vmul.f32 %v545_v10, %v261_v7  ;;  %v666_v14 = vmul.f32 %v540_v11, %v258_v8  ;;  %v667_v15 = vmul.f32 %v540_v11, %v259_v9 }
  0xe7   : > { %771 = vst [vmem:[%s986_s22 + $0x2b0] sm:$0xff] %v668_v12  ;;  %772 = vst.msk [vmem:[%s986_s22 + $0x2b8] sm:$0xff] %vm685_vm0, %v669_v13 }
  0xe8   : > { %769 = vst [vmem:[%s986_s22 + $0x2a0] sm:$0xff] %v666_v14  ;;  %770 = vst.msk [vmem:[%s986_s22 + $0x2a8] sm:$0xff] %vm685_vm0, %v667_v15  ;;  %v555_v20 = vpop.permute.xlu1 %554  ;;  %v550_v21 = vpop.permute.xlu0 %549 }
  0xe9   : > { %v672_v22 = vmul.f32 %v555_v20, %v264_v16  ;;  %v673_v23 = vmul.f32 %v555_v20, %v265_v17  ;;  %v670_v24 = vmul.f32 %v550_v21, %v262_v18  ;;  %v671_v25 = vmul.f32 %v550_v21, %v263_v19 }
  0xeb   : > { %775 = vst [vmem:[%s986_s22 + $0x2d0] sm:$0xff] %v672_v22  ;;  %776 = vst.msk [vmem:[%s986_s22 + $0x2d8] sm:$0xff] %vm685_vm0, %v673_v23 }
  0xec   : > { %773 = vst [vmem:[%s986_s22 + $0x2c0] sm:$0xff] %v670_v24  ;;  %774 = vst.msk [vmem:[%s986_s22 + $0x2c8] sm:$0xff] %vm685_vm0, %v671_v25  ;;  %v565_v30 = vpop.permute.xlu1 %564  ;;  %v560_v31 = vpop.permute.xlu0 %559 }
  0xed   : > { %v676_v32 = vmul.f32 %v565_v30, %v268_v26  ;;  %v677_v33 = vmul.f32 %v565_v30, %v269_v27  ;;  %v674_v34 = vmul.f32 %v560_v31, %v266_v28  ;;  %v675_v35 = vmul.f32 %v560_v31, %v267_v29 }
  0xef   : > { %779 = vst [vmem:[%s986_s22 + $0x2f0] sm:$0xff] %v676_v32  ;;  %780 = vst.msk [vmem:[%s986_s22 + $0x2f8] sm:$0xff] %vm685_vm0, %v677_v33 }
  0xf0   : > { %777 = vst [vmem:[%s986_s22 + $0x2e0] sm:$0xff] %v674_v34  ;;  %778 = vst.msk [vmem:[%s986_s22 + $0x2e8] sm:$0xff] %vm685_vm0, %v675_v35  ;;  %v575_v40 = vpop.permute.xlu1 %574  ;;  %v570_v41 = vpop.permute.xlu0 %569 }
  0xf1   : > { %v680_v42 = vmul.f32 %v575_v40, %v272_v36  ;;  %v681_v43 = vmul.f32 %v575_v40, %v273_v37  ;;  %v678_v44 = vmul.f32 %v570_v41, %v270_v38  ;;  %v679_v45 = vmul.f32 %v570_v41, %v271_v39 }
  0xf3   : > { %783 = vst [vmem:[%s986_s22 + $0x310] sm:$0xff] %v680_v42  ;;  %784 = vst.msk [vmem:[%s986_s22 + $0x318] sm:$0xff] %vm685_vm0, %v681_v43 }
  0xf4   : > { %781 = vst [vmem:[%s986_s22 + $0x300] sm:$0xff] %v678_v44  ;;  %782 = vst.msk [vmem:[%s986_s22 + $0x308] sm:$0xff] %vm685_vm0, %v679_v45  ;;  %v580_v48 = vpop.permute.xlu0 %579 }
  0xf5   : > { %v682_v49 = vmul.f32 %v580_v48, %v274_v46  ;;  %v683_v50 = vmul.f32 %v580_v48, %v275_v47 }
  0xf7   : > { %785 = vst [vmem:[%s986_s22 + $0x320] sm:$0xff] %v682_v49  ;;  %786 = vst.msk [vmem:[%s986_s22 + $0x328] sm:$0xff] %vm685_vm0, %v683_v50 }
  0xf8 PF: > { %s12_s9 = sadd.s32 1, %s888_s9  }
  0xf9   : > { %p9_p4 = scmp.ge.s32.totalorder %s12_s9, 4  }
  0xfb   :  { %11 = sbr.rel (!%p9_p4) target bundleno = 1 (0x1), region = 61 }

</bundles_post_ra>
